<compile_context>
chip_gen: v7x
topology: tpu7x:2x2x1
jax: 0.10.0
libtpu: 0.0.40
codegen_flags: <defaults>
</compile_context>

<pallas_src>
import functools

import jax
import jax.numpy as jnp
import numpy as np
from jax.experimental import pallas as pl
from jax.experimental.pallas import tpu as pltpu


def _round_up(x: int, m: int) -> int:
    return ((x + m - 1) // m) * m


def _supcon_kernel(anchor_ref, contrast_ref, o_ref,
                   m_scr, l_scr, s_scr, c_scr,
                   *, inv_temp, loss_scale, bsz, a_valid, n_valid,
                   col_padded, row_padded, matmul_dtype):
    """Online (flash-style) SupCon pass over one (A-tile, N-tile) grid cell."""
    ai = pl.program_id(0)            # anchor-tile index ("parallel")
    ni = pl.program_id(1)            # contrast-tile index (reduction, "arbitrary")
    n_last = pl.num_programs(1) - 1

    t_a = anchor_ref.shape[0]
    t_n = contrast_ref.shape[0]

    @pl.when(ni == 0)
    def _init():
        m_scr[...] = jnp.full_like(m_scr, -1e30)
        l_scr[...] = jnp.zeros_like(l_scr)
        s_scr[...] = jnp.zeros_like(s_scr)
        c_scr[...] = jnp.zeros_like(c_scr)

    # Fold 1/(temperature + 1e-8) into the smaller (t_a, d) operand.  All softmax /
    # log math stays f32 regardless of the matmul input dtype.
    anchor = anchor_ref[...] * inv_temp
    a_op = anchor.astype(matmul_dtype)
    c_op = contrast_ref[...].astype(matmul_dtype)

    # raw[i, j] = (anchor_i . contrast_j) / (temperature + 1e-8)   (MXU)
    raw = jax.lax.dot_general(a_op, c_op, (((1,), (1,)), ((), ())),
                              preferred_element_type=jnp.float32)   # (t_a, t_n)

    # Global row/col indices of this tile -> positive & self masks via index math.
    row_g = ai * t_a + jax.lax.broadcasted_iota(jnp.int32, (t_a, t_n), 0)
    col_g = ni * t_n + jax.lax.broadcasted_iota(jnp.int32, (t_a, t_n), 1)

    neg_big = jnp.float32(-1e30)
    not_self = row_g != col_g
    if col_padded:
        col_valid = col_g < n_valid                    # padded contrast columns
        lm = jnp.logical_and(not_self, col_valid)      # logits_mask (no self)
        masked_for_max = jnp.where(col_valid, raw, neg_big)
    else:
        lm = not_self
        masked_for_max = raw
    pos = jnp.logical_and(((row_g - col_g) % bsz) == 0, lm)
    pos_f = pos.astype(jnp.float32)

    # Row max (includes the self column like the reference; excludes padding).
    m_old = m_scr[...]
    m_new = jnp.maximum(m_old, jnp.max(masked_for_max, axis=1, keepdims=True))

    # Online masked log-sum-exp (rescale running denom by exp(m_old - m_new)).
    # where-before-exp keeps padded/self columns at exp(~-1e30) -> 0 (no inf*0).
    p = jnp.exp(jnp.where(lm, raw, neg_big) - m_new)
    alpha = jnp.exp(m_old - m_new)
    l_scr[...] = l_scr[...] * alpha + jnp.sum(p, axis=1, keepdims=True)
    m_scr[...] = m_new

    # Positive-pair running sums on raw logits (row max subtracted at finalize).
    s_scr[...] = s_scr[...] + jnp.sum(pos_f * raw, axis=1, keepdims=True)
    c_scr[...] = c_scr[...] + jnp.sum(pos_f, axis=1, keepdims=True)

    @pl.when(ni == n_last)
    def _finalize():
        m = m_scr[...]
        l = l_scr[...]
        s = s_scr[...]
        c = c_scr[...]
        log_denom = jnp.log(l + 1e-8)
        # sum_j mask*log_prob = s - c*(m + log_denom); divide by #positives.
        mean_log_prob_pos = (s - c * (m + log_denom)) / (c + 1e-8)
        loss_row = (-loss_scale) * mean_log_prob_pos                  # (t_a, 1)
        if row_padded:
            row_idx = ai * t_a + jax.lax.broadcasted_iota(jnp.int32, (t_a, 1), 0)
            loss_row = jnp.where(row_idx < a_valid, loss_row, 0.0)    # drop pad rows
        o_ref[0, 0] = jnp.sum(loss_row)            # per-A-tile partial sum (SMEM)


def multi_supcon_loss1(features, mask=None, *, temperature=0.07,
                       base_temperature=0.07, contrast_mode='all',
                       block_a=256, block_n=1024,
                       matmul_dtype=jnp.float32):
    """Pallas implementation of MultiSupConLoss1.forward (smiles=None, mask=None path).

    features:     [bsz, n_views, ...] float32.
    matmul_dtype: set to jnp.bfloat16 for native-rate MXU input (softmax math stays
                  f32); expect ~1e-3 relative numerics delta vs the f32 reference.
    """
    if features.ndim < 3:
        raise ValueError("`features` needs to be [bsz, n_views, ...]")
    if mask is not None:
        # TODO(synk): custom [bsz,bsz] masks and the `smiles` Tanimoto branch
        # (RDKit calc_mol_sim) need a gathered per-tile mask stream; only the
        # default eye(bsz) mask is fused in-kernel here.
        raise NotImplementedError("custom `mask` is not supported by this kernel")

    bsz, n_views = features.shape[0], features.shape[1]
    features = features.reshape(bsz, n_views, -1).astype(jnp.float32)
    d = features.shape[-1]

    # contrast_feature = torch.cat(torch.unbind(features, dim=1), dim=0)
    contrast_feature = jnp.transpose(features, (1, 0, 2)).reshape(n_views * bsz, d)

    if contrast_mode == 'one':
        anchor_feature = features[:, 0]
        anchor_count = 1
    elif contrast_mode == 'all':
        anchor_feature = contrast_feature
        anchor_count = n_views
    else:
        raise ValueError(f"Unknown mode: {contrast_mode}")

    A = anchor_count * bsz          # anchor rows
    N = n_views * bsz               # contrast rows

    # Pad the contraction dim to full 128 lanes (zeros are exact for dots) and
    # force (8,128)-aligned tiles that divide the padded extents.
    d_pad = _round_up(d, 128)
    t_a = min(_round_up(block_a, 8), _round_up(A, 8))
    t_n = min(_round_up(block_n, 128), _round_up(N, 128))
    a_pad = _round_up(A, t_a)
    n_pad = _round_up(N, t_n)

    anchor_p = jnp.pad(anchor_feature, ((0, a_pad - A), (0, d_pad - d)))
    contrast_p = jnp.pad(contrast_feature, ((0, n_pad - N), (0, d_pad - d)))

    n_a_tiles = a_pad // t_a
    n_n_tiles = n_pad // t_n

    kernel = functools.partial(
        _supcon_kernel,
        inv_temp=float(1.0 / (temperature + 1e-8)),
        loss_scale=float(temperature / base_temperature),
        bsz=int(bsz), a_valid=int(A), n_valid=int(N),
        col_padded=bool(n_pad != N), row_padded=bool(a_pad != A),
        matmul_dtype=matmul_dtype)

    cost = pl.CostEstimate(
        flops=2 * a_pad * n_pad * d_pad,
        transcendentals=a_pad * n_pad,
        bytes_accessed=4 * (a_pad * d_pad * n_n_tiles
                            + n_pad * d_pad * n_a_tiles
                            + n_a_tiles))

    partials = pl.pallas_call(
        kernel,
        out_shape=jax.ShapeDtypeStruct((n_a_tiles, 1), jnp.float32),
        grid=(n_a_tiles, n_n_tiles),                 # reduction (N) axis last
        in_specs=[
            pl.BlockSpec((t_a, d_pad), lambda ai, ni: (ai, 0)),
            pl.BlockSpec((t_n, d_pad), lambda ai, ni: (ni, 0)),
        ],
        out_specs=pl.BlockSpec((1, 1), lambda ai, ni: (ai, 0),
                               memory_space=pltpu.SMEM),
        scratch_shapes=[
            pltpu.VMEM((t_a, 1), jnp.float32),   # running row max
            pltpu.VMEM((t_a, 1), jnp.float32),   # running denom
            pltpu.VMEM((t_a, 1), jnp.float32),   # sum of positive logits
            pltpu.VMEM((t_a, 1), jnp.float32),   # count of positives
        ],
        compiler_params=pltpu.CompilerParams(
            dimension_semantics=("parallel", "arbitrary"),
            vmem_limit_bytes=48 * 1024 * 1024),
        cost_estimate=cost,
    )(anchor_p, contrast_p)

    # loss.view(anchor_count, batch_size).mean() / 1000  == (sum over A rows)/A/1000
    return jnp.sum(partials) / (A * 1000.0)


def _reference_loss(features, temperature=0.07, base_temperature=0.07,
                    contrast_mode='all'):
    """Pure-JAX reference mirroring the PyTorch forward (smiles=None, mask=None)."""
    bsz, n_views = features.shape[0], features.shape[1]
    features = features.reshape(bsz, n_views, -1).astype(jnp.float32)
    mask = jnp.eye(bsz, dtype=jnp.float32)
    contrast_feature = jnp.transpose(features, (1, 0, 2)).reshape(n_views * bsz, -1)
    if contrast_mode == 'one':
        anchor_feature = features[:, 0]
        anchor_count = 1
    else:
        anchor_feature = contrast_feature
        anchor_count = n_views
    logits = (anchor_feature @ contrast_feature.T) / (temperature + 1e-8)
    logits = logits - jnp.max(logits, axis=1, keepdims=True)
    A = anchor_feature.shape[0]
    N = contrast_feature.shape[0]
    mask = jnp.tile(mask, (anchor_count, n_views))
    logits_mask = jnp.ones((A, N), jnp.float32).at[
        jnp.arange(A), jnp.arange(A)].set(0.0)
    mask = mask * logits_mask
    exp_logits = jnp.exp(logits) * logits_mask
    log_prob = logits - jnp.log(exp_logits.sum(1, keepdims=True) + 1e-8)
    mean_log_prob_pos = (mask * log_prob).sum(1) / (mask.sum(1) + 1e-8)
    loss = -(temperature / base_temperature) * mean_log_prob_pos
    return loss.reshape(anchor_count, bsz).mean() / 1000.0


if __name__ == "__main__":
    key = jax.random.PRNGKey(0)
    k1, k2 = jax.random.split(key)

    # 1) Small canonical shape (single grid cell after padding, column padding path).
    bsz, n_views, d = 8, 2, 32
    feats = jax.random.normal(k1, (bsz, n_views, d), dtype=jnp.float32)
    feats = feats / jnp.linalg.norm(feats, axis=-1, keepdims=True)
    loss = jax.block_until_ready(multi_supcon_loss1(feats))
    ref = _reference_loss(feats)
    np.testing.assert_allclose(np.asarray(loss), np.asarray(ref),
                               rtol=1e-4, atol=1e-6)

    # 2) Multi-tile grid exercising both row and column padding paths.
    bsz2, n_views2, d2 = 100, 2, 48
    feats2 = jax.random.normal(k2, (bsz2, n_views2, d2), dtype=jnp.float32)
    feats2 = feats2 / jnp.linalg.norm(feats2, axis=-1, keepdims=True)
    loss2 = jax.block_until_ready(
        multi_supcon_loss1(feats2, block_a=64, block_n=128))
    ref2 = _reference_loss(feats2)
    np.testing.assert_allclose(np.asarray(loss2), np.asarray(ref2),
                               rtol=1e-4, atol=1e-6)

    # 3) contrast_mode='one' branch.
    loss3 = jax.block_until_ready(
        multi_supcon_loss1(feats, contrast_mode='one'))
    ref3 = _reference_loss(feats, contrast_mode='one')
    np.testing.assert_allclose(np.asarray(loss3), np.asarray(ref3),
                               rtol=1e-4, atol=1e-6)

    print("KERNEL_OK")
</pallas_src>

<mosaic_0001>
module attributes {stable_mosaic.version = 11 : i64} {
  func.func @_supcon_kernel(%arg0: i32, %arg1: i32, %arg2: memref<16x128xf32, #tpu.memory_space<vmem>>, %arg3: memref<128x128xf32, #tpu.memory_space<vmem>>, %arg4: memref<1x1xf32, #tpu.memory_space<smem>>, %arg5: memref<16x1xf32, #tpu.memory_space<vmem>>, %arg6: memref<16x1xf32, #tpu.memory_space<vmem>>, %arg7: memref<16x1xf32, #tpu.memory_space<vmem>>, %arg8: memref<16x1xf32, #tpu.memory_space<vmem>>) attributes {dimension_semantics = [#tpu.dimension_semantics<parallel>, #tpu.dimension_semantics<arbitrary>], iteration_bounds = array<i64: 1, 1>, scalar_prefetch = 0 : i64, scratch_operands = 4 : i64, tpu.core_type = #tpu.core_type<tc>, window_params = [{transform_indices = @transform_0, window_bounds = array<i64: 16, 128>}, {transform_indices = @transform_1, window_bounds = array<i64: 128, 128>}, {transform_indices = @transform_2, window_bounds = array<i64: 1, 1>}]} {
    %c0_i32 = arith.constant 0 : i32
    %0 = arith.cmpi eq, %arg1, %c0_i32 : i32
    %1 = arith.extui %0 : i1 to i32
    %c0_i32_0 = arith.constant 0 : i32
    %2 = arith.cmpi ne, %1, %c0_i32_0 : i32
    scf.if %2 {
      %cst_35 = arith.constant -1.000000e+30 : f32
      %76 = vector.broadcast %cst_35 : f32 to vector<16x1xf32>
      %c0_36 = arith.constant 0 : index
      %c0_37 = arith.constant 0 : index
      %77 = vector.load %arg5[%c0_36, %c0_37] : memref<16x1xf32, #tpu.memory_space<vmem>>, vector<16x1xf32>
      tpu.vector_store %arg5[%c0_36, %c0_37], %76 {strides = array<i32>} : memref<16x1xf32, #tpu.memory_space<vmem>>, vector<16x1xf32>,
      %cst_38 = arith.constant 0.000000e+00 : f32
      %78 = vector.broadcast %cst_38 : f32 to vector<16x1xf32>
      %c0_39 = arith.constant 0 : index
      %c0_40 = arith.constant 0 : index
      %79 = vector.load %arg6[%c0_39, %c0_40] : memref<16x1xf32, #tpu.memory_space<vmem>>, vector<16x1xf32>
      tpu.vector_store %arg6[%c0_39, %c0_40], %78 {strides = array<i32>} : memref<16x1xf32, #tpu.memory_space<vmem>>, vector<16x1xf32>,
      %cst_41 = arith.constant 0.000000e+00 : f32
      %80 = vector.broadcast %cst_41 : f32 to vector<16x1xf32>
      %c0_42 = arith.constant 0 : index
      %c0_43 = arith.constant 0 : index
      %81 = vector.load %arg7[%c0_42, %c0_43] : memref<16x1xf32, #tpu.memory_space<vmem>>, vector<16x1xf32>
      tpu.vector_store %arg7[%c0_42, %c0_43], %80 {strides = array<i32>} : memref<16x1xf32, #tpu.memory_space<vmem>>, vector<16x1xf32>,
      %cst_44 = arith.constant 0.000000e+00 : f32
      %82 = vector.broadcast %cst_44 : f32 to vector<16x1xf32>
      %c0_45 = arith.constant 0 : index
      %c0_46 = arith.constant 0 : index
      %83 = vector.load %arg8[%c0_45, %c0_46] : memref<16x1xf32, #tpu.memory_space<vmem>>, vector<16x1xf32>
      tpu.vector_store %arg8[%c0_45, %c0_46], %82 {strides = array<i32>} : memref<16x1xf32, #tpu.memory_space<vmem>>, vector<16x1xf32>,
    } else {
    }
    %c0 = arith.constant 0 : index
    %c0_1 = arith.constant 0 : index
    %3 = vector.load %arg2[%c0, %c0_1] : memref<16x128xf32, #tpu.memory_space<vmem>>, vector<16x128xf32>
    %cst = arith.constant 14.2857122 : f32
    %4 = vector.broadcast %cst : f32 to vector<16x128xf32>
    %5 = arith.mulf %3, %4 : vector<16x128xf32>
    %c0_2 = arith.constant 0 : index
    %c0_3 = arith.constant 0 : index
    %6 = vector.load %arg3[%c0_2, %c0_3] : memref<128x128xf32, #tpu.memory_space<vmem>>, vector<128x128xf32>
    %cst_4 = arith.constant dense<0.000000e+00> : vector<16x128xf32>
    %7 = tpu.matmul %5, %6, %cst_4 {dimension_numbers = #tpu.dot_dimension_numbers<[1], [1], [0], [0], [0, 0, 1, 0], [], []>} : vector<16x128xf32>, vector<128x128xf32>, vector<16x128xf32> -> vector<16x128xf32>
    %c16_i32 = arith.constant 16 : i32
    %8 = arith.muli %arg0, %c16_i32 : i32
    %9 = tpu.iota {dimensions = array<i32: 0>} : vector<16x128xi32>
    %10 = vector.broadcast %8 : i32 to vector<16x128xi32>
    %11 = arith.addi %10, %9 : vector<16x128xi32>
    %c128_i32 = arith.constant 128 : i32
    %12 = arith.muli %arg1, %c128_i32 : i32
    %13 = tpu.iota {dimensions = array<i32: 1>} : vector<16x128xi32>
    %14 = vector.broadcast %12 : i32 to vector<16x128xi32>
    %15 = arith.addi %14, %13 : vector<16x128xi32>
    %16 = arith.cmpi ne, %11, %15 : vector<16x128xi32>
    %c16_i32_5 = arith.constant 16 : i32
    %17 = vector.broadcast %c16_i32_5 : i32 to vector<16x128xi32>
    %18 = arith.cmpi slt, %15, %17 : vector<16x128xi32>
    %19 = arith.andi %16, %18 : vector<16x128xi1>
    %cst_6 = arith.constant -1.000000e+30 : f32
    %20 = vector.broadcast %cst_6 : f32 to vector<16x128xf32>
    %21 = arith.select %18, %7, %20 : vector<16x128xi1>, vector<16x128xf32>
    %22 = arith.subi %11, %15 : vector<16x128xi32>
    %c8_i32 = arith.constant 8 : i32
    %c0_i32_7 = arith.constant 0 : i32
    %23 = arith.cmpi eq, %c8_i32, %c0_i32_7 : i32
    %c1_i32 = arith.constant 1 : i32
    %24 = arith.select %23, %c1_i32, %c8_i32 : i32
    %25 = vector.broadcast %24 : i32 to vector<16x128xi32>
    %26 = arith.remsi %22, %25 : vector<16x128xi32>
    %c0_i32_8 = arith.constant 0 : i32
    %27 = vector.broadcast %c0_i32_8 : i32 to vector<16x128xi32>
    %28 = arith.cmpi ne, %26, %27 : vector<16x128xi32>
    %c0_i32_9 = arith.constant 0 : i32
    %29 = vector.broadcast %c0_i32_9 : i32 to vector<16x128xi32>
    %30 = arith.cmpi slt, %26, %29 : vector<16x128xi32>
    %c0_i32_10 = arith.constant 0 : i32
    %31 = arith.cmpi slt, %24, %c0_i32_10 : i32
    %32 = vector.broadcast %31 : i1 to vector<16x128xi1>
    %33 = vector.broadcast %32 : vector<16x128xi1> to vector<16x128xi1>
    %34 = arith.xori %30, %33 : vector<16x128xi1>
    %35 = arith.andi %34, %28 : vector<16x128xi1>
    %36 = vector.broadcast %24 : i32 to vector<16x128xi32>
    %37 = arith.addi %26, %36 : vector<16x128xi32>
    %38 = arith.select %35, %37, %26 : vector<16x128xi1>, vector<16x128xi32>
    %c0_i32_11 = arith.constant 0 : i32
    %39 = vector.broadcast %c0_i32_11 : i32 to vector<16x128xi32>
    %40 = arith.cmpi eq, %38, %39 : vector<16x128xi32>
    %41 = arith.andi %40, %19 : vector<16x128xi1>
    %42 = arith.extui %41 : vector<16x128xi1> to vector<16x128xi32>
    %43 = arith.sitofp %42 : vector<16x128xi32> to vector<16x128xf32>
    %c0_12 = arith.constant 0 : index
    %c0_13 = arith.constant 0 : index
    %44 = vector.load %arg5[%c0_12, %c0_13] : memref<16x1xf32, #tpu.memory_space<vmem>>, vector<16x1xf32>
    %cst_14 = arith.constant dense<0xFF800000> : vector<16xf32>
    %45 = vector.multi_reduction <maximumf>, %21, %cst_14 [1] : vector<16x128xf32> to vector<16xf32>
    %46 = vector.shape_cast %45 : vector<16xf32> to vector<16x1xf32>
    %47 = arith.maximumf %44, %46 : vector<16x1xf32>
    %cst_15 = arith.constant -1.000000e+30 : f32
    %48 = vector.broadcast %cst_15 : f32 to vector<16x128xf32>
    %49 = arith.select %19, %7, %48 : vector<16x128xi1>, vector<16x128xf32>
    %50 = vector.broadcast %47 : vector<16x1xf32> to vector<16x128xf32>
    %51 = arith.subf %49, %50 : vector<16x128xf32>
    %52 = math.exp %51 : vector<16x128xf32>
    %53 = arith.subf %44, %47 : vector<16x1xf32>
    %54 = math.exp %53 : vector<16x1xf32>
    %c0_16 = arith.constant 0 : index
    %c0_17 = arith.constant 0 : index
    %55 = vector.load %arg6[%c0_16, %c0_17] : memref<16x1xf32, #tpu.memory_space<vmem>>, vector<16x1xf32>
    %56 = arith.mulf %55, %54 : vector<16x1xf32>
    %cst_18 = arith.constant dense<0.000000e+00> : vector<16xf32>
    %57 = vector.multi_reduction <add>, %52, %cst_18 [1] : vector<16x128xf32> to vector<16xf32>
    %58 = vector.shape_cast %57 : vector<16xf32> to vector<16x1xf32>
    %59 = arith.addf %56, %58 : vector<16x1xf32>
    %c0_19 = arith.constant 0 : index
    %c0_20 = arith.constant 0 : index
    %60 = vector.load %arg6[%c0_19, %c0_20] : memref<16x1xf32, #tpu.memory_space<vmem>>, vector<16x1xf32>
    tpu.vector_store %arg6[%c0_19, %c0_20], %59 {strides = array<i32>} : memref<16x1xf32, #tpu.memory_space<vmem>>, vector<16x1xf32>,
    %c0_21 = arith.constant 0 : index
    %c0_22 = arith.constant 0 : index
    %61 = vector.load %arg5[%c0_21, %c0_22] : memref<16x1xf32, #tpu.memory_space<vmem>>, vector<16x1xf32>
    tpu.vector_store %arg5[%c0_21, %c0_22], %47 {strides = array<i32>} : memref<16x1xf32, #tpu.memory_space<vmem>>, vector<16x1xf32>,
    %c0_23 = arith.constant 0 : index
    %c0_24 = arith.constant 0 : index
    %62 = vector.load %arg7[%c0_23, %c0_24] : memref<16x1xf32, #tpu.memory_space<vmem>>, vector<16x1xf32>
    %63 = arith.mulf %43, %7 : vector<16x128xf32>
    %cst_25 = arith.constant dense<0.000000e+00> : vector<16xf32>
    %64 = vector.multi_reduction <add>, %63, %cst_25 [1] : vector<16x128xf32> to vector<16xf32>
    %65 = vector.shape_cast %64 : vector<16xf32> to vector<16x1xf32>
    %66 = arith.addf %62, %65 : vector<16x1xf32>
    %c0_26 = arith.constant 0 : index
    %c0_27 = arith.constant 0 : index
    %67 = vector.load %arg7[%c0_26, %c0_27] : memref<16x1xf32, #tpu.memory_space<vmem>>, vector<16x1xf32>
    tpu.vector_store %arg7[%c0_26, %c0_27], %66 {strides = array<i32>} : memref<16x1xf32, #tpu.memory_space<vmem>>, vector<16x1xf32>,
    %c0_28 = arith.constant 0 : index
    %c0_29 = arith.constant 0 : index
    %68 = vector.load %arg8[%c0_28, %c0_29] : memref<16x1xf32, #tpu.memory_space<vmem>>, vector<16x1xf32>
    %cst_30 = arith.constant dense<0.000000e+00> : vector<16xf32>
    %69 = vector.multi_reduction <add>, %43, %cst_30 [1] : vector<16x128xf32> to vector<16xf32>
    %70 = vector.shape_cast %69 : vector<16xf32> to vector<16x1xf32>
    %71 = arith.addf %68, %70 : vector<16x1xf32>
    %c0_31 = arith.constant 0 : index
    %c0_32 = arith.constant 0 : index
    %72 = vector.load %arg8[%c0_31, %c0_32] : memref<16x1xf32, #tpu.memory_space<vmem>>, vector<16x1xf32>
    tpu.vector_store %arg8[%c0_31, %c0_32], %71 {strides = array<i32>} : memref<16x1xf32, #tpu.memory_space<vmem>>, vector<16x1xf32>,
    %c0_i32_33 = arith.constant 0 : i32
    %73 = arith.cmpi eq, %arg1, %c0_i32_33 : i32
    %74 = arith.extui %73 : i1 to i32
    %c0_i32_34 = arith.constant 0 : i32
    %75 = arith.cmpi ne, %74, %c0_i32_34 : i32
    scf.if %75 {
      %c0_35 = arith.constant 0 : index
      %c0_36 = arith.constant 0 : index
      %76 = vector.load %arg5[%c0_35, %c0_36] : memref<16x1xf32, #tpu.memory_space<vmem>>, vector<16x1xf32>
      %c0_37 = arith.constant 0 : index
      %c0_38 = arith.constant 0 : index
      %77 = vector.load %arg6[%c0_37, %c0_38] : memref<16x1xf32, #tpu.memory_space<vmem>>, vector<16x1xf32>
      %c0_39 = arith.constant 0 : index
      %c0_40 = arith.constant 0 : index
      %78 = vector.load %arg7[%c0_39, %c0_40] : memref<16x1xf32, #tpu.memory_space<vmem>>, vector<16x1xf32>
      %c0_41 = arith.constant 0 : index
      %c0_42 = arith.constant 0 : index
      %79 = vector.load %arg8[%c0_41, %c0_42] : memref<16x1xf32, #tpu.memory_space<vmem>>, vector<16x1xf32>
      %cst_43 = arith.constant 9.99999993E-9 : f32
      %80 = vector.broadcast %cst_43 : f32 to vector<16x1xf32>
      %81 = arith.addf %77, %80 : vector<16x1xf32>
      %82 = math.log %81 : vector<16x1xf32>
      %83 = arith.addf %76, %82 : vector<16x1xf32>
      %84 = arith.mulf %79, %83 : vector<16x1xf32>
      %85 = arith.subf %78, %84 : vector<16x1xf32>
      %cst_44 = arith.constant 9.99999993E-9 : f32
      %86 = vector.broadcast %cst_44 : f32 to vector<16x1xf32>
      %87 = arith.addf %79, %86 : vector<16x1xf32>
      %88 = arith.divf %85, %87 : vector<16x1xf32>
      %cst_45 = arith.constant -1.000000e+00 : f32
      %89 = vector.broadcast %cst_45 : f32 to vector<16x1xf32>
      %90 = arith.mulf %89, %88 : vector<16x1xf32>
      %91 = vector.shape_cast %90 : vector<16x1xf32> to vector<1x16x1xf32>
      %cst_46 = arith.constant dense<0.000000e+00> : vector<1xf32>
      %92 = vector.multi_reduction <add>, %91, %cst_46 [1, 2] : vector<1x16x1xf32> to vector<1xf32>
      %93 = vector.shape_cast %92 : vector<1xf32> to vector<1x1x1xf32>
      %94 = vector.extract %93[0, 0, 0] : f32 from vector<1x1x1xf32>
      %c0_47 = arith.constant 0 : index
      %c0_48 = arith.constant 0 : index
      %95 = memref.load %arg4[%c0_47, %c0_48] : memref<1x1xf32, #tpu.memory_space<smem>>
      memref.store %94, %arg4[%c0_47, %c0_48] : memref<1x1xf32, #tpu.memory_space<smem>>
    } else {
    }
    return
  }
  func.func @transform_0(%arg0: i32, %arg1: i32) -> (i32, i32) {
    %c0_i32 = arith.constant 0 : i32
    %c0_i32_0 = arith.constant 0 : i32
    return %arg0, %c0_i32 : i32, i32
  }
  func.func @transform_1(%arg0: i32, %arg1: i32) -> (i32, i32) {
    %c0_i32 = arith.constant 0 : i32
    %c0_i32_0 = arith.constant 0 : i32
    return %arg1, %c0_i32 : i32, i32
  }
  func.func @transform_2(%arg0: i32, %arg1: i32) -> (i32, i32) {
    %c0_i32 = arith.constant 0 : i32
    %c0_i32_0 = arith.constant 0 : i32
    return %arg0, %c0_i32 : i32, i32
  }
}

</mosaic_0001>

<bundles_post_ra>
// kernel: tpu_custom_call.1
= control target key start
LH: loop header
LB: loop body
LE: loop exit
PB: predicated region body
PF: predicated region fallthrough
CT: control target
= control target key end

     0   :  { %7 = vsyncpa [#allocation7], 0  ;;  %s604_s0 = inlined_call_operand.hbm [shape: f32[16,128], index: 0, kind: input, shape index: {}]   ;;  %s605_s1 = inlined_call_operand.hbm [shape: f32[128,128], index: 1, kind: input, shape index: {}]   ;;  %s606_s2 = inlined_call_operand.hbm [shape: f32[1,1], index: 2, kind: output, shape index: {}]  }
   0x1   :  { %8 = vsyncpa [#allocation10], 0 }
   0x2   :  { %9 = vsyncpa [#allocation8], 0  ;;  %s507_s9 = smov [#allocation6]   ;;  %s447_s13 = scalar_lea.hbm %s604_s0, 256 }
   0x3   :  { %s15_s10 = sshll.u32 %s507_s9, 4  ;;  %p448_p0 = scmp.ne.s32.totalorder %s604_s0, %s447_s13  ;;  %s16_s10 = int_to_ptr.vmem [resolvable:$true] %s15_s10 }
   0x4   :  { %p451_p1 = scmp.lt.u32.totalorder %s447_s13, %s604_s0 }
   0x6   :  { %p453_p2 = pnand %p451_p1, %p448_p0 }
   0x8   :  { %456 = shalt.err (!%p453_p2)
}
   0x9   :  { %s457_s18 = scalar_lea.vmem %s16_s10, 256  ;;  %p462_p4 = scmp.lt.s32.totalorder %s16_s10, %s16_s10 }
   0xa   :  { %p458_p3 = scmp.ne.s32.totalorder %s16_s10, %s457_s18  ;;  %p463_p5 = scmp.lt.s32.totalorder %s457_s18, %s457_s18 }
   0xc   :  { %p464_p6 = por %p463_p5, %p462_p4 }
   0xe   :  { %p465_p7 = pnand %p464_p6, %p458_p3 }
  0x10   :  { %468 = shalt.err (!%p465_p7)
}
  0x11   :  { %s508_s19 = smov 128   ;;  %s509_s20 = smov 8  }
  0x12   :  { %21 = dma.hbm_to_vmem [thread:$0]  %s604_s0, 256, %s16_s10, [#allocation7], %s508_s19, %s508_s19, %s509_s20  }
  0x13   :  { %s510_s23 = smov [#allocation9]   ;;  %s469_s27 = scalar_lea.hbm %s605_s1, 2048 }
  0x14   :  { %s27_s24 = sshll.u32 %s510_s23, 4  ;;  %p470_p8 = scmp.ne.s32.totalorder %s605_s1, %s469_s27  ;;  %s28_s24 = int_to_ptr.vmem [resolvable:$true] %s27_s24 }
  0x15   :  { %p473_p9 = scmp.lt.u32.totalorder %s469_s27, %s605_s1 }
  0x17   :  { %p475_p10 = pnand %p473_p9, %p470_p8 }
  0x19   :  { %478 = shalt.err (!%p475_p10)
}
  0x1a   :  { %s479_s4 = scalar_lea.vmem %s28_s24, 2048  ;;  %p484_p12 = scmp.lt.s32.totalorder %s28_s24, %s28_s24 }
  0x1b   :  { %p480_p11 = scmp.ne.s32.totalorder %s28_s24, %s479_s4  ;;  %p485_p13 = scmp.lt.s32.totalorder %s479_s4, %s479_s4 }
  0x1d   :  { %p486_p0 = por %p485_p13, %p484_p12 }
  0x1f   :  { %p487_p1 = pnand %p486_p0, %p480_p11 }
  0x21   :  { %490 = shalt.err (!%p487_p1)
}
  0x22   :  { %33 = dma.hbm_to_vmem [thread:$0]  %s605_s1, 2048, %s28_s24, [#allocation10], %s508_s19, %s508_s19, %s509_s20  }
  0x23   :  { %501 = dma.done.wait [#allocation7], 256  }
  0x24   :  { %502 = vsyncadd [#allocation7], 4294967040 }
  0x25   :  { %503 = dma.done.wait [#allocation10], 2048  }
  0x26   :  { %504 = vsyncadd [#allocation10], 4294965248  ;;  %v57_v0 = vld [vmem:[#allocation9] sm:$0xff]  ;;  %v58_v1 = vld [vmem:[#allocation9 + $0x8] sm:$0xff]  ;;  %v149_v28 = vlaneseq  ;;  %v511_v50 = vmov 0.0   ;;  %v513_v62 = vmov 0  }
  0x27   :  { %v59_v2 = vld [vmem:[#allocation9 + $0x10] sm:$0xff]  ;;  %v387_v3 = vpack.c.bf16 %v58_v1, %v57_v0  ;;  %v60_v4 = vld [vmem:[#allocation9 + $0x18] sm:$0xff]  ;;  %v61_v7 = vld [vmem:[#allocation9 + $0x20] sm:$0xff]  ;;  %v512_v53 = vmov -1e+30   ;;  %429 = vset.pattern.permute.xlu1 %v513_v62  ;;  %430 = vset.pattern.permute.xlu0 %v513_v62  ;;  %s491_s8 = scalar_lea.hbm %s606_s2, 16 }
  0x28   :  { %v391_v5 = vpack.c.bf16 %v60_v4, %v59_v2  ;;  %v53_v6 = vld [vmem:[#allocation6] sm:$0xff]  ;;  %v62_v8 = vld [vmem:[#allocation9 + $0x28] sm:$0xff]  ;;  %v64_v12 = vld [vmem:[#allocation9 + $0x38] sm:$0xff]  ;;  %v150_v29 = vshrl.u32 %v149_v28, 7  ;;  %v157_v30 = vand.u32 127, %v149_v28  ;;  %p492_p2 = scmp.ne.s32.totalorder %s606_s2, %s491_s8  ;;  %p495_p3 = scmp.lt.u32.totalorder %s491_s8, %s606_s2 }
  0x29   :  { %388 = vmatprep.subr.bf16.mxu0 %v387_v3  ;;  %v55_v9 = vmul.f32 14.285712, %v53_v6  ;;  %v395_v10 = vpack.c.bf16 %v62_v8, %v61_v7  ;;  %v63_v11 = vld [vmem:[#allocation9 + $0x30] sm:$0xff]  ;;  %v65_v14 = vld [vmem:[#allocation9 + $0x40] sm:$0xff]  ;;  %v66_v15 = vld [vmem:[#allocation9 + $0x48] sm:$0xff] }
  0x2a   :  { %390 = vmatpush3.bf16.xpose.msra.mxu0 %v387_v3  ;;  %v399_v13 = vpack.c.bf16 %v64_v12, %v63_v11  ;;  %v403_v16 = vpack.c.bf16 %v66_v15, %v65_v14  ;;  %v67_v17 = vld [vmem:[#allocation9 + $0x50] sm:$0xff]  ;;  %v68_v18 = vld [vmem:[#allocation9 + $0x58] sm:$0xff]  ;;  %v69_v20 = vld [vmem:[#allocation9 + $0x60] sm:$0xff]  ;;  %v151_v31 = vadd.s32 8, %v150_v29  ;;  %v167_v33 = vsub.s32 %v150_v29, %v157_v30  ;;  %p497_p4 = pnand %p495_p3, %p492_p2 }
  0x2b   :  { %392 = vmatprep.subr.bf16.mxu0 %v391_v5  ;;  %384 = vmatprep.mubr.f32.mxu0 %v55_v9  ;;  %v407_v19 = vpack.c.bf16 %v68_v18, %v67_v17  ;;  %v70_v21 = vld [vmem:[#allocation9 + $0x68] sm:$0xff]  ;;  %v71_v23 = vld [vmem:[#allocation9 + $0x70] sm:$0xff]  ;;  %v72_v24 = vld [vmem:[#allocation9 + $0x78] sm:$0xff]  ;;  %vm162_vm7 = vcmp.lt.s32.totalorder %v157_v30, 16  ;;  %vm160_vm10 = vcmp.ne.s32.totalorder %v150_v29, %v157_v30 }
  0x2c   :  { %v411_v22 = vpack.c.bf16 %v70_v21, %v69_v20  ;;  %v415_v25 = vpack.c.bf16 %v72_v24, %v71_v23  ;;  %v54_v26 = vld [vmem:[#allocation6 + $0x8] sm:$0xff]  ;;  %v168_v32 = vsub.s32 %v151_v31, %v157_v30  ;;  %v170_v35 = vsub.s32 0, %v167_v33  ;;  %vm560_vm13 = vmand %vm160_vm10, %vm162_vm7 }
  0x2d   :  { %v56_v27 = vmul.f32 14.285712, %v54_v26  ;;  %vm169_vm1 = vcmp.lt.s32.totalorder %v167_v33, 0  ;;  %vm161_vm8 = vcmp.ne.s32.totalorder %v151_v31, %v157_v30 }
  0x2e   :  { %v177_v34 = vsub.s32 0, %v168_v32  ;;  %v330_v37 = vmin.u32 %v170_v35, %v167_v33  ;;  %vm176_vm0 = vcmp.lt.s32.totalorder %v168_v32, 0  ;;  %vm555_vm11 = vmand %vm161_vm8, %vm162_vm7 }
  0x30   :  { %v331_v36 = vmin.u32 %v177_v34, %v168_v32  ;;  %v173_v39 = vand.u32 7, %v330_v37 }
  0x32   :  { %394 = vmatpush3.bf16.xpose.msra.mxu0 %v391_v5  ;;  %v180_v38 = vand.u32 7, %v331_v36  ;;  %v174_v41 = vsub.s32 0, %v173_v39 }
  0x33   :  { %396 = vmatprep.subr.bf16.mxu0 %v395_v10 }
  0x34   :  { %v181_v40 = vsub.s32 0, %v180_v38  ;;  %v175_v43 = vsel %vm169_vm1, %v174_v41, %v173_v39  ;;  %vm44_vm1 = vcmask 7168  }
  0x35   :  { %vm183_vm4 = vcmp.ne.s32.totalorder %v175_v43, 0  ;;  %vm185_vm5 = vcmp.lt.s32.totalorder %v175_v43, 0  ;;  %v189_v45 = vadd.s32 8, %v175_v43  ;;  %45 = vst.msk [vmem:[#allocation2] sm:$0xff] %vm44_vm1, %v512_v53  ;;  %46 = vst.msk [vmem:[#allocation2 + $0x8] sm:$0xff] %vm44_vm1, %v512_v53 }
  0x36   :  { %v182_v42 = vsel %vm176_vm0, %v181_v40, %v180_v38  ;;  %vm187_vm9 = vmand %vm185_vm5, %vm183_vm4  ;;  %47 = vst.msk [vmem:[#allocation3] sm:$0xff] %vm44_vm1, %v511_v50 }
  0x37   :  { %vm184_vm2 = vcmp.ne.s32.totalorder %v182_v42, 0  ;;  %vm186_vm3 = vcmp.lt.s32.totalorder %v182_v42, 0  ;;  %v190_v44 = vadd.s32 8, %v182_v42  ;;  %v191_v48 = vsel %vm187_vm9, %v189_v45, %v175_v43  ;;  %48 = vst.msk [vmem:[#allocation3 + $0x8] sm:$0xff] %vm44_vm1, %v511_v50  ;;  %49 = vst.msk [vmem:[#allocation4] sm:$0xff] %vm44_vm1, %v511_v50 }
  0x38   :  { %vm188_vm6 = vmand %vm186_vm3, %vm184_vm2  ;;  %vm193_vm14 = vcmp.eq.s32.totalorder %v191_v48, 0  ;;  %50 = vst.msk [vmem:[#allocation4 + $0x8] sm:$0xff] %vm44_vm1, %v511_v50 }
  0x39   :  { %v192_v46 = vsel %vm188_vm6, %v190_v44, %v182_v42  ;;  %vm195_vm15 = vmand %vm193_vm14, %vm560_vm13  ;;  %51 = vst.msk [vmem:[#allocation5] sm:$0xff] %vm44_vm1, %v511_v50 }
  0x3a   :  { %398 = vmatpush3.bf16.xpose.msra.mxu0 %v395_v10  ;;  %vm194_vm12 = vcmp.eq.s32.totalorder %v192_v46, 0  ;;  %v332_v51 = vsel %vm195_vm15, 1.0, %v511_v50  ;;  %52 = vst.msk [vmem:[#allocation5 + $0x8] sm:$0xff] %vm44_vm1, %v511_v50 }
  0x3b   :  { %400 = vmatprep.subr.bf16.mxu0 %v399_v13  ;;  %vm196_vm0 = vmand %vm194_vm12, %vm555_vm11 }
  0x3c   :  { %v333_v52 = vsel %vm196_vm0, 1.0, %v511_v50  ;;  %v201_v63 = vld [vmem:[#allocation2] sm:$0xff]  ;;  %v202_v2 = vld [vmem:[#allocation2 + $0x8] sm:$0xff] }
  0x3d   :  { %v233_v18 = vld [vmem:[#allocation3] sm:$0xff] }
  0x3e   :  { %v248_v33 = vld [vmem:[#allocation4] sm:$0xff] }
  0x3f   :  { %v249_v38 = vld [vmem:[#allocation4 + $0x8] sm:$0xff] }
  0x40   :  { %v260_v24 = vld [vmem:[#allocation5] sm:$0xff] }
  0x41   :  { %v261_v30 = vld [vmem:[#allocation5 + $0x8] sm:$0xff] }
  0x42   :  { %402 = vmatpush3.bf16.xpose.msra.mxu0 %v399_v13 }
  0x43   :  { %404 = vmatprep.subr.bf16.mxu0 %v403_v16 }
  0x4a   :  { %406 = vmatpush3.bf16.xpose.msra.mxu0 %v403_v16 }
  0x4b   :  { %408 = vmatprep.subr.bf16.mxu0 %v407_v19 }
  0x52   :  { %410 = vmatpush3.bf16.xpose.msra.mxu0 %v407_v19 }
  0x53   :  { %412 = vmatprep.subr.bf16.mxu0 %v411_v22 }
  0x5a   :  { %414 = vmatpush3.bf16.xpose.msra.mxu0 %v411_v22  ;;  %v234_v22 = vld [vmem:[#allocation3 + $0x8] sm:$0xff] }
  0x5b   :  { %416 = vmatprep.subr.bf16.mxu0 %v415_v25 }
  0x62   :  { %418 = vmatpush3.bf16.xpose.msra.mxu0 %v415_v25 }
  0x69   :  { %385 = vmatmul.mubr.f32.vlgmr.msra.gmra.mrb[0].mxu0 %v56_v27 }
 0x13c   :  { %v386_v54 = vpop.f32.mrb[0].mxu0 }
 0x13d   :  { %v139_v55 = vpop.f32.mrb[1].mxu0  ;;  %v210_v56 = vsel %vm555_vm11, %v386_v54, -1e+30  ;;  %v251_v57 = vmul.f32 %v386_v54, %v333_v52  ;;  %v166_v61 = vsel %vm162_vm7, %v386_v54, -1e+30 }
 0x13e   :  { %v165_v58 = vsel %vm162_vm7, %v139_v55, -1e+30  ;;  %v209_v59 = vsel %vm560_vm13, %v139_v55, -1e+30  ;;  %v250_v60 = vmul.f32 %v332_v51, %v139_v55 }
 0x13f   :  { %203 = vmax.xlane.f32.xlu0 %v165_v58 }
 0x143   :  { %205 = vmax.xlane.f32.xlu0 %v166_v61 }
 0x1cc   :  { %v204_v0 = vpop.xlane.xlu0 %203 }
 0x1cd   :  { %v207_v1 = vmax.f32 %v201_v63, %v204_v0 }
 0x1cf   :  { %v227_v3 = vsub.f32 %v201_v63, %v207_v1  ;;  %246 = vst.msk [vmem:[#allocation2] sm:$0xff] %vm44_vm1, %v207_v1  ;;  %213 = vperm.xlu1 %429, %v207_v1  }
 0x1d0   :  { %v206_v4 = vpop.xlane.xlu0 %205 }
 0x1d1   :  { %v208_v5 = vmax.f32 %v202_v2, %v206_v4  ;;  %v229_v15 = vmul.f32 1.442695, %v227_v3 }
 0x1d3   :  { %v228_v6 = vsub.f32 %v202_v2, %v208_v5  ;;  %247 = vst.msk [vmem:[#allocation2 + $0x8] sm:$0xff] %vm44_vm1, %v208_v5  ;;  %218 = vperm.xlu1 %429, %v208_v5  }
 0x1d5   :  { %v231_v16 = vmul.f32 1.442695, %v228_v6 }
 0x1d6   :  { %v273_v49 = vld [vmem:[#allocation2] sm:$0xff] }
 0x1da   :  { %v274_v55 = vld [vmem:[#allocation2 + $0x8] sm:$0xff] }
 0x24e   :  { %v214_v7 = vpop.permute.xlu1 %213 }
 0x24f   :  { %v221_v8 = vsub.f32 %v209_v59, %v214_v7 }
 0x251   :  { %v223_v9 = vmul.f32 1.442695, %v221_v8 }
 0x252   :  { %v219_v10 = vpop.permute.xlu1 %218 }
 0x253   :  { %431 = vpow2.f32 %v223_v9  ;;  %v222_v11 = vsub.f32 %v210_v56, %v219_v10 }
 0x255   :  { %v225_v12 = vmul.f32 1.442695, %v222_v11 }
 0x257   :  { %433 = vpow2.f32 %v225_v12 }
 0x258   :  { %435 = vpow2.f32 %v229_v15 }
 0x259   :  { %437 = vpow2.f32 %v231_v16 }
 0x25d   :  { %v432_v13 = vpop.eup %431 }
 0x25e   :  { %237 = vadd.xlane.f32.xlu0 %v432_v13 }
 0x261   :  { %v434_v14 = vpop.eup %433 }
 0x262   :  { %262 = vadd.xlane.f32.xlu0 %v332_v51  ;;  %239 = vadd.xlane.f32.xlu1 %v434_v14  ;;  %v436_v17 = vpop.eup %435 }
 0x263   :  { %v235_v19 = vmul.f32 %v436_v17, %v233_v18  ;;  %v438_v20 = vpop.eup %437 }
 0x264   :  { %v236_v25 = vmul.f32 %v438_v20, %v234_v22 }
 0x266   :  { %264 = vadd.xlane.f32.xlu0 %v333_v52 }
 0x26a   :  { %252 = vadd.xlane.f32.xlu0 %v250_v60 }
 0x26e   :  { %254 = vadd.xlane.f32.xlu0 %v251_v57 }
 0x2eb   :  { %v238_v21 = vpop.xlane.xlu0 %237 }
 0x2ec   :  { %v241_v23 = vadd.f32 %v238_v21, %v235_v19 }
 0x2ee   :  { %244 = vst.msk [vmem:[#allocation3] sm:$0xff] %vm44_vm1, %v241_v23 }
 0x2ef   :  { %v263_v26 = vpop.xlane.xlu0 %262  ;;  %v240_v27 = vpop.xlane.xlu1 %239 }
 0x2f0   :  { %v266_v28 = vadd.f32 %v263_v26, %v260_v24  ;;  %v242_v29 = vadd.f32 %v240_v27, %v236_v25 }
 0x2f2   :  { %268 = vst.msk [vmem:[#allocation5] sm:$0xff] %vm44_vm1, %v266_v28  ;;  %245 = vst.msk [vmem:[#allocation3 + $0x8] sm:$0xff] %vm44_vm1, %v242_v29 }
 0x2f3   :  { %v265_v31 = vpop.xlane.xlu0 %264 }
 0x2f4   :  { %v267_v32 = vadd.f32 %v265_v31, %v261_v30 }
 0x2f5   :  { %v275_v34 = vld [vmem:[#allocation3] sm:$0xff] }
 0x2f6   :  { %269 = vst.msk [vmem:[#allocation5 + $0x8] sm:$0xff] %vm44_vm1, %v267_v32  ;;  %v281_v35 = vadd.f32 1e-08, %v275_v34 }
 0x2f7   :  { %v253_v36 = vpop.xlane.xlu0 %252 }
 0x2f8   :  { %v256_v37 = vadd.f32 %v253_v36, %v248_v33  ;;  %439 = vlog2.f32 %v281_v35 }
 0x2f9   :  { %v276_v39 = vld [vmem:[#allocation3 + $0x8] sm:$0xff]  ;;  %v279_v40 = vld [vmem:[#allocation5] sm:$0xff] }
 0x2fa   :  { %258 = vst.msk [vmem:[#allocation4] sm:$0xff] %vm44_vm1, %v256_v37  ;;  %v282_v41 = vadd.f32 1e-08, %v276_v39  ;;  %v293_v42 = vadd.f32 1e-08, %v279_v40 }
 0x2fb   :  { %v255_v43 = vpop.xlane.xlu0 %254 }
 0x2fc   :  { %v257_v44 = vadd.f32 %v255_v43, %v249_v38  ;;  %441 = vlog2.f32 %v282_v41 }
 0x2fd   :  { %v280_v45 = vld [vmem:[#allocation5 + $0x8] sm:$0xff]  ;;  %443 = vrcp.f32 %v293_v42 }
 0x2fe   :  { %259 = vst.msk [vmem:[#allocation4 + $0x8] sm:$0xff] %vm44_vm1, %v257_v44  ;;  %v294_v46 = vadd.f32 1e-08, %v280_v45 }
 0x300   :  { %445 = vrcp.f32 %v294_v46 }
 0x301   :  { %v277_v56 = vld [vmem:[#allocation4] sm:$0xff] }
 0x302   :  { %v440_v47 = vpop.eup %439 }
 0x303   :  { %v284_v48 = vmul.f32 0.6931472, %v440_v47 }
 0x305   :  { %v287_v50 = vadd.f32 %v284_v48, %v273_v49  ;;  %v278_v62 = vld [vmem:[#allocation4 + $0x8] sm:$0xff] }
 0x306   :  { %v442_v51 = vpop.eup %441 }
 0x307   :  { %v286_v52 = vmul.f32 0.6931472, %v442_v51  ;;  %v289_v53 = vmul.f32 %v287_v50, %v279_v40  ;;  %v444_v54 = vpop.eup %443 }
 0x309   :  { %v288_v57 = vadd.f32 %v286_v52, %v274_v55  ;;  %v291_v58 = vsub.f32 %v277_v56, %v289_v53 }
 0x30a   :  { %v446_v61 = vpop.eup %445 }
 0x30b   :  { %v290_v59 = vmul.f32 %v288_v57, %v280_v45  ;;  %v296_v60 = vmul.f32 %v444_v54, %v291_v58 }
 0x30d   :  { %v292_v63 = vsub.f32 %v278_v62, %v290_v59  ;;  %v299_v1 = vmul.f32 -1.0, %v296_v60 }
 0x30f   :  { %v298_v0 = vmul.f32 %v446_v61, %v292_v63  ;;  %v301_v3 = vsel %vm44_vm1, %v299_v1, 0.0 }
 0x311   :  { %v300_v2 = vmul.f32 -1.0, %v298_v0 }
 0x313   :  { %v302_v4 = vsel %vm44_vm1, %v300_v2, 0.0 }
 0x314   :  { %v303_v5 = vadd.f32 %v302_v4, %v301_v3 }
 0x316   :  { %304 = vadd.xlane.f32.xlu0 %v303_v5 }
 0x3a3   :  { %v305_v6 = vpop.xlane.xlu0 %304 }
 0x3a4   :  { %v306_v7 = vrot.slane %v305_v6, 4 }
 0x3a6   :  { %v307_v8 = vadd.f32 %v306_v7, %v305_v6 }
 0x3a8   :  { %v308_v9 = vrot.slane %v307_v8, 2 }
 0x3aa   :  { %v309_v10 = vadd.f32 %v308_v9, %v307_v8 }
 0x3ac   :  { %v310_v11 = vrot.slane %v309_v10, 1 }
 0x3ae   :  { %v311_v12 = vadd.f32 %v310_v11, %v309_v10 }
 0x3b0   :  { %419 = vpush %v311_v12 }
 0x3e1   :  { %s420_s1 = spop %419 }
 0x3e2   :  { %314 = sst [smem:[#allocation11]] %s420_s1 }
 0x3e3   :  { %500 = shalt.err (!%p497_p4)
}
 0x3e4   :  { %s514_s13 = smov [#allocation11]  }
 0x3e5   :  { %322 = dma.smem_to_hbm %s514_s13, 16, %s606_s2, [#allocation8]  }
 0x3e6   :  { %505 = dma.done.wait [#allocation8], 16  }
 0x3e7   :  { %506 = vsyncadd [#allocation8], 4294967280 }
 0x3e8   :  { %326 = sfence }
 0x3e9   :  { %327 = vsyncpa [#allocation7], 1 }
 0x3ea   :  { %328 = vsyncpa [#allocation10], 1 }
 0x3eb   :  { %329 = vsyncpa [#allocation8], 1 }

</bundles_post_ra>
